<compile_context>
chip_gen: v7x
topology: tpu7x:2x2x1
jax: 0.10.0
libtpu: 0.0.40
codegen_flags: <defaults>
</compile_context>

<pallas_src>
import jax
import jax.numpy as jnp
from jax.experimental import pallas as pl
from jax.experimental.pallas import tpu as pltpu

_F32 = 4
_VMEM_LIMIT_BYTES = 48 * 1024 * 1024    # scoped-VMEM request (headroom, fits v7x 64 MiB physical)
_BLOCK_BUDGET_BYTES = 16 * 1024 * 1024  # conservative in-flight estimate used to size tiles
_TARGET_MEM_BYTES = 2 * 1024 * 1024     # aim for ~2 MiB of `memory` DMA per grid step


def _make_kernel(nt, use_mxu_ctx):
    """Kernel factory.  nt = static number of T tiles; the softmax over T is computed
    online so arbitrarily long sequences stream through a bounded VMEM block."""

    def kernel(q_ref, mem_ref, wq_ref, wk_ref, v_ref,
               ctx_ref, align_ref,
               m_sc, l_sc, acc_sc, scores_sc):
        # q_ref    : (TB, Dd)      block of queries
        # mem_ref  : (TB, TT, E)   block of encoder memory (one T tile)
        # wq_ref   : (Dd, U), wk_ref : (E, U), v_ref : (1, U)   resident weights
        # ctx_ref  : (TB, E), align_ref : (TB, T)               resident across T tiles
        # scratch  : m_sc (TB,1), l_sc (TB,1), acc_sc (TB,E), scores_sc (nt,TB,TT)
        TB, TT, E = mem_ref.shape
        U = wq_ref.shape[1]
        j = pl.program_id(1)                                      # T-tile index (innermost)

        @pl.when(j == 0)
        def _init():
            m_sc[...] = jnp.full(m_sc.shape, -jnp.inf, jnp.float32)
            l_sc[...] = jnp.zeros(l_sc.shape, jnp.float32)
            acc_sc[...] = jnp.zeros(acc_sc.shape, jnp.float32)

        mem = mem_ref[...]                                        # (TB, TT, E)

        # Query projection: one small batched matmul per step (cost << key projection).
        proj_q = jnp.dot(q_ref[...], wq_ref[...],
                         preferred_element_type=jnp.float32)      # (TB, U)

        # Key projection as ONE (TB*TT, E) @ (E, U) MXU matmul per step.  The reshapes
        # are layout no-ops because TT is a multiple of 8 (or equals T).
        proj_k = jnp.dot(mem.reshape(TB * TT, E), wk_ref[...],
                         preferred_element_type=jnp.float32).reshape(TB, TT, U)

        w = jnp.tanh(proj_q[:, None, :] + proj_k)                 # (TB, TT, U)
        # Width-1 score dot -> VPU multiply + XLU lane reduce (keeps the MXU free).
        s = jnp.sum(w * v_ref[...].reshape(1, 1, U), axis=-1)     # (TB, TT)

        # Stash raw scores so alignments can be emitted with the final softmax stats.
        scores_sc[j] = s

        # Online softmax statistics + context accumulation over the T tiles.
        m_prev = m_sc[...]
        m_new = jnp.maximum(m_prev, jnp.max(s, axis=-1, keepdims=True))   # (TB, 1)
        alpha = jnp.exp(m_prev - m_new)                                   # (TB, 1)
        p = jnp.exp(s - m_new)                                            # (TB, TT)
        l_sc[...] = alpha * l_sc[...] + jnp.sum(p, axis=-1, keepdims=True)
        if use_mxu_ctx:
            # Moderate/large TT: batched MXU contraction avoids a (TB, TT, E) VPU temp.
            pc = jnp.einsum("bqt,bte->bqe", p[:, None, :], mem,
                            preferred_element_type=jnp.float32)[:, 0, :]  # (TB, E)
        else:
            # Small TT: VPU multiply + sublane reduce; no wasted M=1 MXU passes.
            pc = jnp.sum(p[:, :, None] * mem, axis=1)                     # (TB, E)
        acc_sc[...] = alpha * acc_sc[...] + pc
        m_sc[...] = m_new

        @pl.when(j == nt - 1)
        def _finalize():
            # Exact reciprocal keeps 1e-5 parity with the f32 reference.
            inv_l = pl.reciprocal(l_sc[...], approx=False)
            m_fin = m_sc[...]
            for jj in range(nt):                 # static unroll; static lane slices only
                al = jnp.exp(scores_sc[jj] - m_fin) * inv_l
                align_ref[:, jj * TT:(jj + 1) * TT] = al.astype(align_ref.dtype)
            ctx_ref[...] = (acc_sc[...] * inv_l).astype(ctx_ref.dtype)

    return kernel


def _attention_call(queries, memory, wq, wk, v2, TB, TT, n_rows=None):
    """Run the fused attention kernel over the first `n_rows` batch rows.

    `queries`/`memory` may have MORE rows than `n_rows`: the grid simply never touches
    them, which avoids any large HBM pad/slice copy of `memory` for ragged batches.
    """
    n_in, Dd = queries.shape
    _, T, E = memory.shape
    U = wq.shape[1]
    if n_rows is None:
        n_rows = n_in
    assert n_rows % TB == 0 and T % TT == 0
    nb = n_rows // TB
    nt = T // TT
    use_mxu_ctx = TT >= 64

    flops = 2 * n_rows * (T * E * U + Dd * U + T * E) + 6 * n_rows * T * U
    transcendentals = n_rows * T * (U + 2)
    bytes_accessed = _F32 * (n_rows * (T * E + Dd + E + T) + Dd * U + E * U + U)

    return pl.pallas_call(
        _make_kernel(nt, use_mxu_ctx),
        out_shape=(
            jax.ShapeDtypeStruct((n_rows, E), jnp.float32),
            jax.ShapeDtypeStruct((n_rows, T), jnp.float32),
        ),
        grid_spec=pltpu.PrefetchScalarGridSpec(
            num_scalar_prefetch=0,
            grid=(nb, nt),
            in_specs=[
                pl.BlockSpec((TB, Dd), lambda i, j: (i, 0)),
                pl.BlockSpec((TB, TT, E), lambda i, j: (i, j, 0)),
                pl.BlockSpec((Dd, U), lambda i, j: (0, 0)),   # weights stay resident
                pl.BlockSpec((E, U), lambda i, j: (0, 0)),
                pl.BlockSpec((1, U), lambda i, j: (0, 0)),
            ],
            out_specs=[
                pl.BlockSpec((TB, E), lambda i, j: (i, 0)),   # resident across the T axis
                pl.BlockSpec((TB, T), lambda i, j: (i, 0)),
            ],
            scratch_shapes=[
                pltpu.VMEM((TB, 1), jnp.float32),             # running max
                pltpu.VMEM((TB, 1), jnp.float32),             # running denominator
                pltpu.VMEM((TB, E), jnp.float32),             # context accumulator
                pltpu.VMEM((nt, TB, TT), jnp.float32),        # raw scores (for alignments)
            ],
        ),
        compiler_params=pltpu.CompilerParams(
            dimension_semantics=("parallel", "arbitrary"),
            vmem_limit_bytes=_VMEM_LIMIT_BYTES,
        ),
        cost_estimate=pl.CostEstimate(
            flops=flops, transcendentals=transcendentals, bytes_accessed=bytes_accessed),
    )(queries, memory, wq, wk, v2)


def _choose_tiles(N, T, E, Dd, U, block_batch=None, block_t=None):
    """Pick (TB, TT): batch rows and T length per grid step.

    TT is a divisor of T (multiple of 8, or T itself).  TB targets ~_TARGET_MEM_BYTES of
    `memory` DMA per step, capped by a conservative per-step VMEM estimate.
    """

    def per_row_bytes(tt):
        # Conservative in-flight VMEM per batch row for one grid step.
        return _F32 * (
            3 * tt * E          # double-buffered memory block + reshape / ctx temp
            + 3 * tt * U        # proj_k, tanh argument, broadcast temp
            + 4 * tt            # p / exp temporaries
            + 3 * T             # raw-score scratch + alignment temp + output buffer
            + 4 * E             # context accumulator + double-buffered ctx output
            + 2 * Dd + 2 * U)   # double-buffered query block + query projection

    fixed = 2 * _F32 * (Dd * U + E * U + U)        # resident weights (double-buffered)

    # ----- T tile -----
    if block_t is not None:
        TT = int(block_t)
        assert T % TT == 0 and (TT % 8 == 0 or TT == T), "block_t must tile T (8-aligned)"
    else:
        cands = sorted({T} | {d for d in range(8, T, 8) if T % d == 0}, reverse=True)
        TT = cands[-1]
        for tt in cands:                           # largest TT an 8-row block can afford
            if fixed + 8 * per_row_bytes(tt) <= _BLOCK_BUDGET_BYTES:
                TT = tt
                break

    # ----- batch tile -----
    if block_batch is not None:
        TB = int(block_batch)
        if TB < N:
            TB = max(8, (TB // 8) * 8)             # sublane alignment for multi-block grids
    else:
        tb_dma = _TARGET_MEM_BYTES // max(TT * E * _F32, 1)
        tb_vmem = (_BLOCK_BUDGET_BYTES - fixed) // max(per_row_bytes(TT), 1)
        TB = int(min(max(tb_dma, 8), max(tb_vmem, 8), 2048))
        if N >= 16:
            # Keep >= 2 batch blocks so v7x's two TensorCores both get work.
            TB = min(TB, max(8, ((N // 2) // 8) * 8))
        TB = max(8, (TB // 8) * 8)

    return min(TB, N), TT


def bahdanau_attention(queries, memory, wq, wk, v, *, block_batch=None, block_t=None):
    """queries: [N, Dd], memory: [N, T, E], wq: [Dd, U], wk: [E, U], v: [U]."""
    N, Dd = queries.shape
    Nm, T, E = memory.shape
    assert Nm == N
    U = wq.shape[1]
    v2 = v.reshape(1, U)

    TB, TT = _choose_tiles(N, T, E, Dd, U, block_batch, block_t)

    if TB >= N:
        # Whole batch in one block (block dims equal the full array dims).
        return _attention_call(queries, memory, wq, wk, v2, N, TT)

    # Main call covers the largest TB-aligned prefix directly on the UNSLICED inputs
    # (no HBM pad/slice copy of `memory`); a tiny second call handles the ragged tail.
    n_main = (N // TB) * TB
    ctx_m, al_m = _attention_call(queries, memory, wq, wk, v2, TB, TT, n_rows=n_main)
    if n_main == N:
        return ctx_m, al_m
    ctx_r, al_r = _attention_call(queries[n_main:], memory[n_main:], wq, wk, v2,
                                  N - n_main, TT)
    return (jnp.concatenate([ctx_m, ctx_r], axis=0),
            jnp.concatenate([al_m, al_r], axis=0))


def _reference(queries, memory, wq, wk, v):
    # Plain-JAX reference matching the PyTorch forward (normalize=False, no mask).
    proj_q = queries[:, None, :] @ wq          # [N,1,U]
    proj_k = memory @ wk                       # [N,T,U]
    weights = jnp.tanh(proj_q + proj_k) @ v    # [N,T]
    align = jax.nn.softmax(weights, axis=-1)   # [N,T]
    ctx = jnp.einsum("nt,nte->ne", align, memory)
    return ctx, align


if __name__ == "__main__":
    encoder_dim = 32
    decoder_dim = 32
    num_units = 32

    key = jax.random.PRNGKey(0)
    k1, k2, k3 = jax.random.split(key, 3)

    # Deterministic parameter init (shapes per module __init__):
    #   v ~ U[0,1) (torch.rand), linear weights ~ U(-1/sqrt(fan_in), 1/sqrt(fan_in)).
    v = jax.random.uniform(k1, (num_units,), dtype=jnp.float32)
    wq = jax.random.uniform(
        k2, (decoder_dim, num_units), dtype=jnp.float32,
        minval=-1.0 / jnp.sqrt(decoder_dim), maxval=1.0 / jnp.sqrt(decoder_dim))
    wk = jax.random.uniform(
        k3, (encoder_dim, num_units), dtype=jnp.float32,
        minval=-1.0 / jnp.sqrt(encoder_dim), maxval=1.0 / jnp.sqrt(encoder_dim))

    # Case 1: tiny batch, single full block.
    # Case 2: multi-block batch grid with a ragged tail handled without padding memory.
    # Case 3: T-tiled online softmax (nt=2) + MXU context path (TT=64).
    cases = [
        (2, 8, None, None, 1e-5),
        (20, 8, 8, None, 1e-5),
        (16, 128, 8, 64, 2e-5),
    ]
    for N, T, block_batch, block_t, tol in cases:
        kq, km = jax.random.split(jax.random.fold_in(key, N * 1000 + T))
        # queries [N, 1, decoder_dim] -> squeeze to [N, decoder_dim]; memory [N, T, encoder_dim]
        queries = jax.random.normal(kq, (N, 1, decoder_dim), dtype=jnp.float32)
        memory = jax.random.normal(km, (N, T, encoder_dim), dtype=jnp.float32)
        q2d = queries[:, 0, :]

        contexts, alignments = bahdanau_attention(
            q2d, memory, wq, wk, v, block_batch=block_batch, block_t=block_t)
        contexts = jax.block_until_ready(contexts)
        alignments = jax.block_until_ready(alignments)

        ref_ctx, ref_align = _reference(q2d, memory, wq, wk, v)
        assert contexts.shape == (N, encoder_dim)
        assert alignments.shape == (N, T)
        assert jnp.allclose(contexts, ref_ctx, atol=tol, rtol=tol), ("ctx", N, T)
        assert jnp.allclose(alignments, ref_align, atol=tol, rtol=tol), ("align", N, T)

    print("KERNEL_OK")
</pallas_src>

<mosaic_0001>
module attributes {stable_mosaic.version = 11 : i64} {
  func.func @kernel(%arg0: i32, %arg1: i32, %arg2: memref<2x32xf32, #tpu.memory_space<vmem>>, %arg3: memref<2x8x32xf32, #tpu.memory_space<vmem>>, %arg4: memref<32x32xf32, #tpu.memory_space<vmem>>, %arg5: memref<32x32xf32, #tpu.memory_space<vmem>>, %arg6: memref<1x32xf32, #tpu.memory_space<vmem>>, %arg7: memref<2x32xf32, #tpu.memory_space<vmem>>, %arg8: memref<2x8xf32, #tpu.memory_space<vmem>>, %arg9: memref<2x1xf32, #tpu.memory_space<vmem>>, %arg10: memref<2x1xf32, #tpu.memory_space<vmem>>, %arg11: memref<2x32xf32, #tpu.memory_space<vmem>>, %arg12: memref<1x2x8xf32, #tpu.memory_space<vmem>>) attributes {dimension_semantics = [#tpu.dimension_semantics<parallel>, #tpu.dimension_semantics<arbitrary>], iteration_bounds = array<i64: 1, 1>, scalar_prefetch = 0 : i64, scratch_operands = 4 : i64, tpu.core_type = #tpu.core_type<tc>, window_params = [{transform_indices = @transform_0, window_bounds = array<i64: 2, 32>}, {transform_indices = @transform_1, window_bounds = array<i64: 2, 8, 32>}, {pipeline_mode = #tpu.pipeline_mode<synchronous>, transform_indices = @transform_2, window_bounds = array<i64: 32, 32>}, {pipeline_mode = #tpu.pipeline_mode<synchronous>, transform_indices = @transform_3, window_bounds = array<i64: 32, 32>}, {pipeline_mode = #tpu.pipeline_mode<synchronous>, transform_indices = @transform_4, window_bounds = array<i64: 1, 32>}, {transform_indices = @transform_5, window_bounds = array<i64: 2, 32>}, {transform_indices = @transform_6, window_bounds = array<i64: 2, 8>}]} {
    %c0_i32 = arith.constant 0 : i32
    %0 = arith.cmpi eq, %arg1, %c0_i32 : i32
    %1 = arith.extui %0 : i1 to i32
    %c0_i32_0 = arith.constant 0 : i32
    %2 = arith.cmpi ne, %1, %c0_i32_0 : i32
    scf.if %2 {
      %cst_32 = arith.constant 0xFF800000 : f32
      %52 = vector.broadcast %cst_32 : f32 to vector<2x1xf32>
      %c0_33 = arith.constant 0 : index
      %c0_34 = arith.constant 0 : index
      %53 = vector.load %arg9[%c0_33, %c0_34] : memref<2x1xf32, #tpu.memory_space<vmem>>, vector<2x1xf32>
      tpu.vector_store %arg9[%c0_33, %c0_34], %52 {strides = array<i32>} : memref<2x1xf32, #tpu.memory_space<vmem>>, vector<2x1xf32>,
      %cst_35 = arith.constant 0.000000e+00 : f32
      %54 = vector.broadcast %cst_35 : f32 to vector<2x1xf32>
      %c0_36 = arith.constant 0 : index
      %c0_37 = arith.constant 0 : index
      %55 = vector.load %arg10[%c0_36, %c0_37] : memref<2x1xf32, #tpu.memory_space<vmem>>, vector<2x1xf32>
      tpu.vector_store %arg10[%c0_36, %c0_37], %54 {strides = array<i32>} : memref<2x1xf32, #tpu.memory_space<vmem>>, vector<2x1xf32>,
      %cst_38 = arith.constant 0.000000e+00 : f32
      %56 = vector.broadcast %cst_38 : f32 to vector<2x32xf32>
      %c0_39 = arith.constant 0 : index
      %c0_40 = arith.constant 0 : index
      %57 = vector.load %arg11[%c0_39, %c0_40] : memref<2x32xf32, #tpu.memory_space<vmem>>, vector<2x32xf32>
      tpu.vector_store %arg11[%c0_39, %c0_40], %56 {strides = array<i32>} : memref<2x32xf32, #tpu.memory_space<vmem>>, vector<2x32xf32>,
    } else {
    }
    %c0 = arith.constant 0 : index
    %c0_1 = arith.constant 0 : index
    %c0_2 = arith.constant 0 : index
    %3 = vector.load %arg3[%c0, %c0_1, %c0_2] : memref<2x8x32xf32, #tpu.memory_space<vmem>>, vector<2x8x32xf32>
    %c0_3 = arith.constant 0 : index
    %c0_4 = arith.constant 0 : index
    %4 = vector.load %arg2[%c0_3, %c0_4] : memref<2x32xf32, #tpu.memory_space<vmem>>, vector<2x32xf32>
    %c0_5 = arith.constant 0 : index
    %c0_6 = arith.constant 0 : index
    %5 = vector.load %arg4[%c0_5, %c0_6] : memref<32x32xf32, #tpu.memory_space<vmem>>, vector<32x32xf32>
    %cst = arith.constant dense<0.000000e+00> : vector<2x32xf32>
    %6 = tpu.matmul %4, %5, %cst {dimension_numbers = #tpu.dot_dimension_numbers<[1], [0], [0], [1], [0, 0, 1, 1], [], []>} : vector<2x32xf32>, vector<32x32xf32>, vector<2x32xf32> -> vector<2x32xf32>
    %7 = vector.shape_cast %3 : vector<2x8x32xf32> to vector<16x32xf32>
    %c0_7 = arith.constant 0 : index
    %c0_8 = arith.constant 0 : index
    %8 = vector.load %arg5[%c0_7, %c0_8] : memref<32x32xf32, #tpu.memory_space<vmem>>, vector<32x32xf32>
    %cst_9 = arith.constant dense<0.000000e+00> : vector<16x32xf32>
    %9 = tpu.matmul %7, %8, %cst_9 {dimension_numbers = #tpu.dot_dimension_numbers<[1], [0], [0], [1], [0, 0, 1, 1], [], []>} : vector<16x32xf32>, vector<32x32xf32>, vector<16x32xf32> -> vector<16x32xf32>
    %10 = vector.shape_cast %9 : vector<16x32xf32> to vector<2x8x32xf32>
    %11 = vector.shape_cast %6 : vector<2x32xf32> to vector<2x1x32xf32>
    %12 = vector.broadcast %11 : vector<2x1x32xf32> to vector<2x8x32xf32>
    %13 = arith.addf %12, %10 : vector<2x8x32xf32>
    %14 = math.tanh %13 : vector<2x8x32xf32>
    %c0_10 = arith.constant 0 : index
    %c0_11 = arith.constant 0 : index
    %15 = vector.load %arg6[%c0_10, %c0_11] : memref<1x32xf32, #tpu.memory_space<vmem>>, vector<1x32xf32>
    %16 = vector.shape_cast %15 : vector<1x32xf32> to vector<1x1x32xf32>
    %17 = vector.broadcast %16 : vector<1x1x32xf32> to vector<2x8x32xf32>
    %18 = arith.mulf %14, %17 : vector<2x8x32xf32>
    %cst_12 = arith.constant dense<0.000000e+00> : vector<2x8xf32>
    %19 = vector.multi_reduction <add>, %18, %cst_12 [2] : vector<2x8x32xf32> to vector<2x8xf32>
    %20 = arith.index_cast %arg1 : i32 to index
    %c0_13 = arith.constant 0 : index
    %c0_14 = arith.constant 0 : index
    %21 = vector.load %arg12[%20, %c0_13, %c0_14] : memref<1x2x8xf32, #tpu.memory_space<vmem>>, vector<1x2x8xf32>
    %22 = vector.shape_cast %21 : vector<1x2x8xf32> to vector<2x8xf32>
    %23 = vector.shape_cast %19 : vector<2x8xf32> to vector<1x2x8xf32>
    tpu.vector_store %arg12[%20, %c0_13, %c0_14], %23 {strides = array<i32>} : memref<1x2x8xf32, #tpu.memory_space<vmem>>, vector<1x2x8xf32>,
    %c0_15 = arith.constant 0 : index
    %c0_16 = arith.constant 0 : index
    %24 = vector.load %arg9[%c0_15, %c0_16] : memref<2x1xf32, #tpu.memory_space<vmem>>, vector<2x1xf32>
    %cst_17 = arith.constant dense<0xFF800000> : vector<2xf32>
    %25 = vector.multi_reduction <maximumf>, %19, %cst_17 [1] : vector<2x8xf32> to vector<2xf32>
    %26 = vector.shape_cast %25 : vector<2xf32> to vector<2x1xf32>
    %27 = arith.maximumf %24, %26 : vector<2x1xf32>
    %28 = arith.subf %24, %27 : vector<2x1xf32>
    %29 = math.exp %28 : vector<2x1xf32>
    %30 = vector.broadcast %27 : vector<2x1xf32> to vector<2x8xf32>
    %31 = arith.subf %19, %30 : vector<2x8xf32>
    %32 = math.exp %31 : vector<2x8xf32>
    %c0_18 = arith.constant 0 : index
    %c0_19 = arith.constant 0 : index
    %33 = vector.load %arg10[%c0_18, %c0_19] : memref<2x1xf32, #tpu.memory_space<vmem>>, vector<2x1xf32>
    %34 = arith.mulf %29, %33 : vector<2x1xf32>
    %cst_20 = arith.constant dense<0.000000e+00> : vector<2xf32>
    %35 = vector.multi_reduction <add>, %32, %cst_20 [1] : vector<2x8xf32> to vector<2xf32>
    %36 = vector.shape_cast %35 : vector<2xf32> to vector<2x1xf32>
    %37 = arith.addf %34, %36 : vector<2x1xf32>
    %c0_21 = arith.constant 0 : index
    %c0_22 = arith.constant 0 : index
    %38 = vector.load %arg10[%c0_21, %c0_22] : memref<2x1xf32, #tpu.memory_space<vmem>>, vector<2x1xf32>
    tpu.vector_store %arg10[%c0_21, %c0_22], %37 {strides = array<i32>} : memref<2x1xf32, #tpu.memory_space<vmem>>, vector<2x1xf32>,
    %39 = vector.shape_cast %32 : vector<2x8xf32> to vector<2x8x1xf32>
    %40 = vector.broadcast %39 : vector<2x8x1xf32> to vector<2x8x32xf32>
    %41 = arith.mulf %40, %3 : vector<2x8x32xf32>
    %cst_23 = arith.constant dense<0.000000e+00> : vector<2x32xf32>
    %42 = vector.multi_reduction <add>, %41, %cst_23 [1] : vector<2x8x32xf32> to vector<2x32xf32>
    %c0_24 = arith.constant 0 : index
    %c0_25 = arith.constant 0 : index
    %43 = vector.load %arg11[%c0_24, %c0_25] : memref<2x32xf32, #tpu.memory_space<vmem>>, vector<2x32xf32>
    %44 = vector.broadcast %29 : vector<2x1xf32> to vector<2x32xf32>
    %45 = arith.mulf %44, %43 : vector<2x32xf32>
    %46 = arith.addf %45, %42 : vector<2x32xf32>
    %c0_26 = arith.constant 0 : index
    %c0_27 = arith.constant 0 : index
    %47 = vector.load %arg11[%c0_26, %c0_27] : memref<2x32xf32, #tpu.memory_space<vmem>>, vector<2x32xf32>
    tpu.vector_store %arg11[%c0_26, %c0_27], %46 {strides = array<i32>} : memref<2x32xf32, #tpu.memory_space<vmem>>, vector<2x32xf32>,
    %c0_28 = arith.constant 0 : index
    %c0_29 = arith.constant 0 : index
    %48 = vector.load %arg9[%c0_28, %c0_29] : memref<2x1xf32, #tpu.memory_space<vmem>>, vector<2x1xf32>
    tpu.vector_store %arg9[%c0_28, %c0_29], %27 {strides = array<i32>} : memref<2x1xf32, #tpu.memory_space<vmem>>, vector<2x1xf32>,
    %c0_i32_30 = arith.constant 0 : i32
    %49 = arith.cmpi eq, %arg1, %c0_i32_30 : i32
    %50 = arith.extui %49 : i1 to i32
    %c0_i32_31 = arith.constant 0 : i32
    %51 = arith.cmpi ne, %50, %c0_i32_31 : i32
    scf.if %51 {
      %c0_32 = arith.constant 0 : index
      %c0_33 = arith.constant 0 : index
      %52 = vector.load %arg10[%c0_32, %c0_33] : memref<2x1xf32, #tpu.memory_space<vmem>>, vector<2x1xf32>
      %53 = tpu.reciprocal %52 : vector<2x1xf32> -> vector<2x1xf32>
      %c0_34 = arith.constant 0 : index
      %c0_35 = arith.constant 0 : index
      %54 = vector.load %arg9[%c0_34, %c0_35] : memref<2x1xf32, #tpu.memory_space<vmem>>, vector<2x1xf32>
      %c0_36 = arith.constant 0 : index
      %c0_37 = arith.constant 0 : index
      %c0_38 = arith.constant 0 : index
      %55 = vector.load %arg12[%c0_36, %c0_37, %c0_38] : memref<1x2x8xf32, #tpu.memory_space<vmem>>, vector<1x2x8xf32>
      %56 = vector.shape_cast %55 : vector<1x2x8xf32> to vector<2x8xf32>
      %57 = vector.broadcast %54 : vector<2x1xf32> to vector<2x8xf32>
      %58 = arith.subf %56, %57 : vector<2x8xf32>
      %59 = math.exp %58 : vector<2x8xf32>
      %60 = vector.broadcast %53 : vector<2x1xf32> to vector<2x8xf32>
      %61 = arith.mulf %59, %60 : vector<2x8xf32>
      %c0_39 = arith.constant 0 : index
      %c0_40 = arith.constant 0 : index
      %62 = vector.load %arg8[%c0_39, %c0_40] : memref<2x8xf32, #tpu.memory_space<vmem>>, vector<2x8xf32>
      tpu.vector_store %arg8[%c0_39, %c0_40], %61 {strides = array<i32>} : memref<2x8xf32, #tpu.memory_space<vmem>>, vector<2x8xf32>,
      %c0_41 = arith.constant 0 : index
      %c0_42 = arith.constant 0 : index
      %63 = vector.load %arg11[%c0_41, %c0_42] : memref<2x32xf32, #tpu.memory_space<vmem>>, vector<2x32xf32>
      %64 = vector.broadcast %53 : vector<2x1xf32> to vector<2x32xf32>
      %65 = arith.mulf %63, %64 : vector<2x32xf32>
      %c0_43 = arith.constant 0 : index
      %c0_44 = arith.constant 0 : index
      %66 = vector.load %arg7[%c0_43, %c0_44] : memref<2x32xf32, #tpu.memory_space<vmem>>, vector<2x32xf32>
      tpu.vector_store %arg7[%c0_43, %c0_44], %65 {strides = array<i32>} : memref<2x32xf32, #tpu.memory_space<vmem>>, vector<2x32xf32>,
    } else {
    }
    return
  }
  func.func @transform_0(%arg0: i32, %arg1: i32) -> (i32, i32) {
    %c0_i32 = arith.constant 0 : i32
    %c0_i32_0 = arith.constant 0 : i32
    return %arg0, %c0_i32 : i32, i32
  }
  func.func @transform_1(%arg0: i32, %arg1: i32) -> (i32, i32, i32) {
    %c0_i32 = arith.constant 0 : i32
    %c0_i32_0 = arith.constant 0 : i32
    return %arg0, %arg1, %c0_i32 : i32, i32, i32
  }
  func.func @transform_2(%arg0: i32, %arg1: i32) -> (i32, i32) {
    %c0_i32 = arith.constant 0 : i32
    %c0_i32_0 = arith.constant 0 : i32
    %c0_i32_1 = arith.constant 0 : i32
    return %c0_i32, %c0_i32_0 : i32, i32
  }
  func.func @transform_3(%arg0: i32, %arg1: i32) -> (i32, i32) {
    %c0_i32 = arith.constant 0 : i32
    %c0_i32_0 = arith.constant 0 : i32
    %c0_i32_1 = arith.constant 0 : i32
    return %c0_i32, %c0_i32_0 : i32, i32
  }
  func.func @transform_4(%arg0: i32, %arg1: i32) -> (i32, i32) {
    %c0_i32 = arith.constant 0 : i32
    %c0_i32_0 = arith.constant 0 : i32
    %c0_i32_1 = arith.constant 0 : i32
    return %c0_i32, %c0_i32_0 : i32, i32
  }
  func.func @transform_5(%arg0: i32, %arg1: i32) -> (i32, i32) {
    %c0_i32 = arith.constant 0 : i32
    %c0_i32_0 = arith.constant 0 : i32
    return %arg0, %c0_i32 : i32, i32
  }
  func.func @transform_6(%arg0: i32, %arg1: i32) -> (i32, i32) {
    %c0_i32 = arith.constant 0 : i32
    %c0_i32_0 = arith.constant 0 : i32
    return %arg0, %c0_i32 : i32, i32
  }
}

</mosaic_0001>

<bundles_post_ra>
// kernel: tpu_custom_call.1
= control target key start
LH: loop header
LB: loop body
LE: loop exit
PB: predicated region body
PF: predicated region fallthrough
CT: control target
= control target key end

     0   :  { %12 = vsyncpa [#allocation7], 0  ;;  %s851_s0 = inlined_call_operand.hbm [shape: f32[2,32], index: 0, kind: input, shape index: {}]   ;;  %s852_s1 = inlined_call_operand.hbm [shape: f32[2,8,32], index: 1, kind: input, shape index: {}]   ;;  %s853_s2 = inlined_call_operand.hbm [shape: f32[32,32], index: 2, kind: input, shape index: {}]   ;;  %s854_s3 = inlined_call_operand.hbm [shape: f32[32,32], index: 3, kind: input, shape index: {}]   ;;  %s855_s4 = inlined_call_operand.vmem [shape: f32[1,32], index: 4, kind: input, shape index: {}]   ;;  %s856_s5 = inlined_call_operand.hbm [shape: f32[2,32], index: 5, kind: output, shape index: {0}]   ;;  %s857_s6 = inlined_call_operand.hbm [shape: f32[2,8], index: 6, kind: output, shape index: {1}]  }
   0x1   :  { %13 = vsyncpa [#allocation10], 0 }
   0x2   :  { %14 = vsyncpa [#allocation13], 0 }
   0x3   :  { %15 = vsyncpa [#allocation8], 0 }
   0x4   :  { %16 = vsyncpa [#allocation16], 0  ;;  %s689_s21 = smov [#allocation9]   ;;  %s547_s25 = scalar_lea.hbm %s852_s1, 256 }
   0x5   :  { %s32_s22 = sshll.u32 %s689_s21, 4  ;;  %p548_p0 = scmp.ne.s32.totalorder %s852_s1, %s547_s25  ;;  %s33_s22 = int_to_ptr.vmem [resolvable:$true] %s32_s22 }
   0x6   :  { %p551_p1 = scmp.lt.u32.totalorder %s547_s25, %s852_s1 }
   0x8   :  { %p553_p2 = pnand %p551_p1, %p548_p0 }
   0xa   :  { %556 = shalt.err (!%p553_p2)
}
   0xb   :  { %s557_s30 = scalar_lea.vmem %s33_s22, 256  ;;  %p562_p4 = scmp.lt.s32.totalorder %s33_s22, %s33_s22 }
   0xc   :  { %p558_p3 = scmp.ne.s32.totalorder %s33_s22, %s557_s30  ;;  %p563_p5 = scmp.lt.s32.totalorder %s557_s30, %s557_s30 }
   0xe   :  { %p564_p6 = por %p563_p5, %p562_p4 }
  0x10   :  { %p565_p7 = pnand %p564_p6, %p558_p3 }
  0x12   :  { %568 = shalt.err (!%p565_p7)
}
  0x13   :  { %s690_s7 = smov 128   ;;  %s691_s8 = smov 8  }
  0x14   :  { %38 = dma.hbm_to_vmem [thread:$0]  %s852_s1, 256, %s33_s22, [#allocation10], %s690_s7, %s690_s7, %s691_s8  }
  0x15   :  { %s692_s11 = smov [#allocation6]   ;;  %s693_s13 = smov [#allocation11]  }
  0x16   :  { %s23_s12 = sshll.u32 %s692_s11, 4  ;;  %s44_s14 = sshll.u32 %s693_s13, 4  ;;  %s24_s12 = int_to_ptr.vmem [resolvable:$true] %s23_s12  ;;  %s45_s14 = int_to_ptr.vmem [resolvable:$true] %s44_s14 }
  0x17   :  { %s569_s17 = scalar_lea.hbm %s851_s0, 32 }
  0x18   :  { %p570_p8 = scmp.ne.s32.totalorder %s851_s0, %s569_s17  ;;  %p573_p9 = scmp.lt.u32.totalorder %s569_s17, %s851_s0 }
  0x1a   :  { %p575_p10 = pnand %p573_p9, %p570_p8 }
  0x1c   :  { %578 = shalt.err (!%p575_p10)
}
  0x1d   :  { %s579_s1 = scalar_lea.vmem %s24_s12, 32  ;;  %p584_p12 = scmp.lt.s32.totalorder %s24_s12, %s24_s12 }
  0x1e   :  { %p580_p11 = scmp.ne.s32.totalorder %s24_s12, %s579_s1  ;;  %p585_p13 = scmp.lt.s32.totalorder %s579_s1, %s579_s1 }
  0x20   :  { %p586_p0 = por %p585_p13, %p584_p12 }
  0x22   :  { %p587_p1 = pnand %p586_p0, %p580_p11 }
  0x24   :  { %590 = shalt.err (!%p587_p1)
}
  0x25   :  { %26 = dma.hbm_to_vmem [thread:$0]  %s851_s0, 32, %s24_s12, [#allocation7]  }
  0x26   :  { %s591_s26 = scalar_lea.hbm %s853_s2, 512 }
  0x27   :  { %p592_p2 = scmp.ne.s32.totalorder %s853_s2, %s591_s26  ;;  %p595_p3 = scmp.lt.u32.totalorder %s591_s26, %s853_s2 }
  0x29   :  { %p597_p4 = pnand %p595_p3, %p592_p2 }
  0x2b   :  { %600 = shalt.err (!%p597_p4)
}
  0x2c   :  { %s601_s9 = scalar_lea.vmem %s45_s14, 512  ;;  %p606_p6 = scmp.lt.s32.totalorder %s45_s14, %s45_s14 }
  0x2d   :  { %p602_p5 = scmp.ne.s32.totalorder %s45_s14, %s601_s9  ;;  %p607_p7 = scmp.lt.s32.totalorder %s601_s9, %s601_s9 }
  0x2f   :  { %p608_p8 = por %p607_p7, %p606_p6 }
  0x31   :  { %p609_p9 = pnand %p608_p8, %p602_p5 }
  0x33   :  { %612 = shalt.err (!%p609_p9)
}
  0x34   :  { %50 = dma.hbm_to_vmem [thread:$0]  %s853_s2, 512, %s45_s14, [#allocation10], %s690_s7, %s690_s7, %s691_s8  }
  0x35   :  { %s694_s11 = smov [#allocation12]   ;;  %s613_s16 = scalar_lea.hbm %s854_s3, 512 }
  0x36   :  { %s56_s12 = sshll.u32 %s694_s11, 4  ;;  %p614_p10 = scmp.ne.s32.totalorder %s854_s3, %s613_s16  ;;  %s57_s12 = int_to_ptr.vmem [resolvable:$true] %s56_s12 }
  0x37   :  { %p617_p11 = scmp.lt.u32.totalorder %s613_s16, %s854_s3 }
  0x39   :  { %p619_p12 = pnand %p617_p11, %p614_p10 }
  0x3b   :  { %622 = shalt.err (!%p619_p12)
}
  0x3c   :  { %s623_s21 = scalar_lea.vmem %s57_s12, 512  ;;  %p628_p0 = scmp.lt.s32.totalorder %s57_s12, %s57_s12 }
  0x3d   :  { %p624_p13 = scmp.ne.s32.totalorder %s57_s12, %s623_s21  ;;  %p629_p1 = scmp.lt.s32.totalorder %s623_s21, %s623_s21 }
  0x3f   :  { %p630_p2 = por %p629_p1, %p628_p0 }
  0x41   :  { %p631_p3 = pnand %p630_p2, %p624_p13 }
  0x43   :  { %634 = shalt.err (!%p631_p3)
}
  0x44   :  { %62 = dma.hbm_to_vmem [thread:$0]  %s854_s3, 512, %s57_s12, [#allocation13], %s690_s7, %s690_s7, %s691_s8  }
  0x45   :  { %679 = dma.done.wait [#allocation7], 32  }
  0x46   :  { %680 = vsyncadd [#allocation7], 4294967264 }
  0x47   :  { %681 = dma.done.wait [#allocation10], 768  }
  0x48   :  { %682 = vsyncadd [#allocation10], 4294966528 }
  0x49   :  { %683 = dma.done.wait [#allocation13], 512  }
  0x4a   :  { %684 = vsyncadd [#allocation13], 4294966784  ;;  %vm81_vm0 = vcmask 1024   ;;  %v695_v0 = vmov 0.0|0.0   ;;  %v696_v1 = vmov -inf   ;;  %v697_v2 = vmov 0.0  }
  0x4b   :  { %503 = vmatprep.subr.bf16.mxu0 %v695_v0  ;;  %82 = vst.msk [vmem:[#allocation2] sm:$0x3] %vm81_vm0, %v696_v1  ;;  %83 = vst.msk [vmem:[#allocation3] sm:$0x3] %vm81_vm0, %v697_v2  ;;  %vm84_vm1 = vcmask 254976   ;;  %vm698_vm2 = vmmov 0   ;;  %v256_v20 = vlaneseq }
  0x4c   :  { %85 = vst.msk [vmem:[#allocation4] sm:$0x3] %vm84_vm1, %v697_v2  ;;  %489 = vmatprep.mubr.msk.f32.mxu0 %vm698_vm2, %v697_v2  ;;  %v89_v3 = vld [vmem:[#allocation11] sm:$0xff]  ;;  %v90_v4 = vld [vmem:[#allocation11 + $0x8] sm:$0xff]  ;;  %v91_v8 = vld [vmem:[#allocation11 + $0x10] sm:$0xff]  ;;  %vm93_vm3 = vcmask 261120  }
  0x4d   :  { %v167_v5 = vld [vmem:[#allocation12] sm:$0xff]  ;;  %v504_v6 = vpack.c.bf16 %v90_v4, %v89_v3  ;;  %v168_v7 = vld [vmem:[#allocation12 + $0x8] sm:$0xff]  ;;  %v92_v9 = vld [vmem:[#allocation11 + $0x18] sm:$0xff]  ;;  %v699_v18 = vmov 1966171168   ;;  %v257_v22 = vshrl.u32 %v256_v20, 7 }
  0x4e   :  { %v509_v10 = vpack.c.bf16 %v168_v7, %v167_v5  ;;  %v169_v11 = vld [vmem:[#allocation12 + $0x10] sm:$0xff]  ;;  %v170_v12 = vld [vmem:[#allocation12 + $0x18] sm:$0xff]  ;;  %v507_v13 = vpack.c.bf16 %v92_v9, %v91_v8  ;;  %v88_v16 = vld [vmem:[#allocation6] sm:$0x3]  ;;  %v254_v19 = vunpack.c.l.s4 %v699_v18  ;;  %v307_v44 = vand.u32 127, %v256_v20  ;;  %s702_s1 = smov [#allocation15]  }
  0x4f   :  { %505 = vmatpush3.bf16.msra.mxu0 %v504_v6  ;;  %v513_v14 = vpack.c.bf16 %v170_v12, %v169_v11  ;;  %v798_v15 = vld [vmem:[#allocation9] sm:$0xff]  ;;  %v802_v17 = vld [vmem:[#allocation9 + $0x8] sm:$0xff]  ;;  %v277_v27 = vsub.s32 0, %v257_v22  ;;  %v469_v37 = vld [vmem:[%s855_s4] ss:$0 sm:$0xff]  ;;  %vm316_vm4 = vcmask 1041409  }
  0x50   :  { %506 = vmatprep.subr.bf16.mxu0 %v695_v0  ;;  %510 = vmatprep.subr.bf16.mxu1 %v509_v10  ;;  %v255_v21 = vunpack.c.0.s8 %v254_v19  ;;  %v310_v46 = vsub.s32 %v307_v44, %v257_v22  ;;  %vm321_vm5 = vcmask 58368   ;;  %v700_v52 = vmov 0   ;;  %s701_s4 = smov [#allocation14]   ;;  %s451_s22 = sshll.u32 %s702_s1, 4  ;;  %s452_s22 = int_to_ptr.vmem [resolvable:$true] %s451_s22 }
  0x51   :  { %512 = vmatpush3.bf16.msra.mxu1 %v509_v10  ;;  %500 = vmatprep.mubr.msk.f32.mxu1 %vm93_vm3, %v798_v15  ;;  %v341_v57 = vsub.s32 1, %v257_v22  ;;  %s441_s8 = sshll.u32 %s701_s4, 4  ;;  %s442_s8 = int_to_ptr.vmem [resolvable:$true] %s441_s8 }
  0x52   :  { %514 = vmatprep.subr.bf16.mxu1 %v513_v14  ;;  %v258_v23 = vsub.s32 %v255_v21, %v257_v22  ;;  %531 = vset.pattern.permute.xlu1 %v700_v52  ;;  %v323_v53 = vld [vmem:[#allocation2] sm:$0x3]  ;;  %s635_s23 = scalar_lea.vmem %s442_s8, 32  ;;  %p640_p5 = scmp.lt.s32.totalorder %s442_s8, %s442_s8 }
  0x53   :  { %508 = vmatpush3.bf16.msra.mxu0 %v507_v13  ;;  %532 = vset.pattern.permute.xlu0 %v700_v52  ;;  %p636_p4 = scmp.ne.s32.totalorder %s442_s8, %s635_s23  ;;  %p641_p6 = scmp.lt.s32.totalorder %s635_s23, %s635_s23 }
  0x55   :  { %516 = vmatpush3.bf16.msra.mxu1 %v513_v14  ;;  %p642_p7 = por %p641_p6, %p640_p5 }
  0x56   :  { %490 = vmatmul.mubr.msk.f32.vlgmr.msra.gmra.mrb[0].mxu0 %vm93_vm3, %v88_v16 }
  0x57   :  { %p643_p8 = pnand %p642_p7, %p636_p4 }
  0x58   :  { %501 = vmatmul.mubr.msk.f32.vlgmr.msra.gmra.mrb[0].mxu1 %vm93_vm3, %v802_v17 }
 0x129   :  { %v163_v24 = vpop.f32.mrb[0].mxu0 }
 0x12a   :  { %v259_v25 = vrot.slane %v163_v24, %v258_v23  ;;  %v491_v26 = vpop.f32.mrb[1].mxu0 }
 0x12b   :  { %v502_v28 = vpop.f32.mrb[0].mxu1 }
 0x12c   :  { %v260_v29 = vcombine.high %v259_v25, %v259_v25  ;;  %v267_v30 = vrot.slane %v259_v25, %v258_v23  ;;  %v243_v31 = vpop.f32.mrb[1].mxu1 }
 0x12e   :  { %v274_v32 = vrot.slane %v260_v29, %v258_v23  ;;  %v278_v33 = vrot.slane %v267_v30, %v277_v27 }
 0x130   :  { %v282_v34 = vrot.slane %v274_v32, %v277_v27  ;;  %v285_v35 = vadd.f32 %v278_v33, %v243_v31 }
 0x132   :  { %v286_v36 = vadd.f32 %v502_v28, %v282_v34  ;;  %533 = vtanh.f32 %v285_v35  ;;  %v351_v34 = vld [vmem:[#allocation3] sm:$0x3] }
 0x134   :  { %535 = vtanh.f32 %v286_v36 }
 0x13c   :  { %v534_v38 = vpop.eup %533 }
 0x13d   :  { %v296_v39 = vmul.f32 %v534_v38, %v469_v37 }
 0x13e   :  { %v536_v40 = vpop.eup %535 }
 0x13f   :  { %v298_v41 = vsel %vm93_vm3, %v296_v39, 0.0  ;;  %v297_v42 = vmul.f32 %v536_v40, %v469_v37 }
 0x140   :  { %299 = vadd.xlane.f32.xlu0 %v298_v41 }
 0x141   :  { %v301_v43 = vsel %vm93_vm3, %v297_v42, 0.0 }
 0x144   :  { %302 = vadd.xlane.f32.xlu0 %v301_v43 }
 0x1cd   :  { %v300_v45 = vpop.xlane.xlu0 %299 }
 0x1ce   :  { %v311_v48 = vrot.slane %v300_v45, %v310_v46 }
 0x1d1   :  { %v303_v47 = vpop.xlane.xlu0 %302 }
 0x1d2   :  { %v315_v49 = vrot.slane %v303_v47, %v310_v46 }
 0x1d4   :  { %v317_v50 = vsel %vm316_vm4, %v315_v49, %v311_v48 }
 0x1d5   :  { %v324_v51 = vsel %vm321_vm5, %v317_v50, -inf  ;;  %322 = vst.msk [vmem:[#allocation5] sm:$0x3] %vm321_vm5, %v317_v50 }
 0x1d6   :  { %325 = vmax.xlane.f32.xlu1 %v324_v51 }
 0x1dc   :  { %v416_v40 = vld [vmem:[#allocation5] sm:$0x3] }
 0x263   :  { %v326_v54 = vpop.xlane.xlu1 %325 }
 0x264   :  { %v327_v55 = vmax.f32 %v323_v53, %v326_v54 }
 0x266   :  { %v328_v56 = vsub.f32 %v323_v53, %v327_v55  ;;  %409 = vst.msk [vmem:[#allocation2] sm:$0x3] %vm81_vm0, %v327_v55  ;;  %333 = vperm.xlu1 %531, %v327_v55  }
 0x268   :  { %v329_v1 = vmul.f32 1.442695, %v328_v56 }
 0x26d   :  { %v415_v4 = vld [vmem:[#allocation2] sm:$0x3] }
 0x2e5   :  { %v334_v58 = vpop.permute.xlu1 %333 }
 0x2e6   :  { %v338_v59 = vrot.slane %v334_v58, %v277_v27  ;;  %v342_v60 = vrot.slane %v334_v58, %v341_v57  ;;  %v395_v27 = vld [vmem:[#allocation4] sm:$0x3] }
 0x2e8   :  { %v345_v61 = vsub.f32 %v300_v45, %v338_v59  ;;  %v346_v62 = vsub.f32 %v303_v47, %v342_v60 }
 0x2ea   :  { %v347_v63 = vmul.f32 1.442695, %v345_v61  ;;  %v349_v0 = vmul.f32 1.442695, %v346_v62 }
 0x2ec   :  { %537 = vpow2.f32 %v347_v63 }
 0x2ed   :  { %539 = vpow2.f32 %v349_v0 }
 0x2ee   :  { %541 = vpow2.f32 %v329_v1 }
 0x2f6   :  { %v538_v2 = vpop.eup %537 }
 0x2f7   :  { %v540_v3 = vpop.eup %539  ;;  %356 = vperm.xlu0 %532, %v538_v2  }
 0x2f8   :  { %359 = vperm.xlu1 %531, %v540_v3   ;;  %v542_v5 = vpop.eup %541 }
 0x2f9   :  { %v352_v35 = vmul.f32 %v542_v5, %v351_v34 }
 0x2fb   :  { %419 = vperm.xlu0 %532, %v415_v4  }
 0x2ff   :  { %398 = vperm.xlu0 %532, %v542_v5  }
 0x376   :  { %v357_v6 = vpop.permute.xlu0 %356 }
 0x377   :  { %v360_v7 = vpop.permute.xlu1 %359  ;;  %v364_v8 = vrot.slane %v357_v6, %v310_v46  ;;  %v379_v9 = vmul.f32 %v357_v6, %v798_v15 }
 0x378   :  { %v368_v10 = vrot.slane %v360_v7, %v310_v46  ;;  %v380_v11 = vmul.f32 %v360_v7, %v802_v17 }
 0x379   :  { %v381_v12 = vsel %vm93_vm3, %v379_v9, 0.0 }
 0x37a   :  { %v388_v13 = vsel %vm93_vm3, %v380_v11, 0.0  ;;  %v382_v14 = vrot.slane %v381_v12, 4  ;;  %v369_v16 = vsel %vm316_vm4, %v368_v10, %v364_v8  ;;  %v420_v22 = vpop.permute.xlu0 %419 }
 0x37b   :  { %v389_v18 = vrot.slane %v388_v13, 4  ;;  %v371_v19 = vsel %vm321_vm5, %v369_v16, 0.0  ;;  %v422_v41 = vsub.f32 %v416_v40, %v420_v22 }
 0x37c   :  { %v383_v20 = vadd.f32 %v382_v14, %v381_v12  ;;  %372 = vadd.xlane.f32.xlu1 %v371_v19 }
 0x37d   :  { %v390_v21 = vadd.f32 %v389_v18, %v388_v13  ;;  %v423_v42 = vmul.f32 1.442695, %v422_v41 }
 0x37e   :  { %v384_v23 = vrot.slane %v383_v20, 2  ;;  %v399_v28 = vpop.permute.xlu0 %398 }
 0x37f   :  { %v391_v24 = vrot.slane %v390_v21, 2  ;;  %v401_v31 = vmul.f32 %v399_v28, %v395_v27 }
 0x380   :  { %v385_v15 = vadd.f32 %v384_v23, %v383_v20 }
 0x381   :  { %v392_v25 = vadd.f32 %v391_v24, %v390_v21 }
 0x382   :  { %v386_v26 = vrot.slane %v385_v15, 1 }
 0x383   :  { %v393_v17 = vrot.slane %v392_v25, 1 }
 0x384   :  { %v387_v29 = vadd.f32 %v386_v26, %v385_v15 }
 0x385   :  { %v394_v30 = vadd.f32 %v393_v17, %v392_v25 }
 0x387   :  { %v404_v32 = vsel %vm316_vm4, %v394_v30, %v387_v29 }
 0x388   :  { %v406_v33 = vadd.f32 %v404_v32, %v401_v31 }
 0x38a   :  { %408 = vst.msk [vmem:[#allocation4] sm:$0x3] %vm84_vm1, %v406_v33 }
 0x391   :  { %v432_v44 = vld [vmem:[#allocation4] sm:$0x3] }
 0x409   :  { %v373_v36 = vpop.xlane.xlu1 %372 }
 0x40a   :  { %v374_v37 = vadd.f32 %v373_v36, %v352_v35 }
 0x40c   :  { %376 = vst.msk [vmem:[#allocation3] sm:$0x3] %vm81_vm0, %v374_v37 }
 0x413   :  { %v413_v38 = vld [vmem:[#allocation3] sm:$0x3] }
 0x414   :  { %543 = vrcp.f32 %v413_v38 }
 0x415   :  { %545 = vpow2.f32 %v423_v42 }
 0x41e   :  { %v544_v39 = vpop.eup %543 }
 0x41f   :  { %427 = vperm.xlu0 %532, %v544_v39   ;;  %v546_v43 = vpop.eup %545 }
 0x49e   :  { %v428_v45 = vpop.permute.xlu0 %427 }
 0x49f   :  { %v430_v46 = vmul.f32 %v546_v43, %v428_v45  ;;  %v433_v47 = vmul.f32 %v432_v44, %v428_v45 }
 0x4a1   :  { %431 = vst.msk [vmem:[#allocation15] sm:$0x3] %vm321_vm5, %v430_v46 }
 0x4a2   :  { %434 = vst.msk [vmem:[#allocation14] sm:$0x3] %vm84_vm1, %v433_v47 }
 0x4a3   :  { %646 = shalt.err (!%p643_p8)
}
 0x4a4   :  { %s647_s26 = scalar_lea.hbm %s856_s5, 32 }
 0x4a5   :  { %p648_p9 = scmp.ne.s32.totalorder %s856_s5, %s647_s26  ;;  %p651_p10 = scmp.lt.u32.totalorder %s647_s26, %s856_s5 }
 0x4a7   :  { %p653_p11 = pnand %p651_p10, %p648_p9 }
 0x4a9   :  { %656 = shalt.err (!%p653_p11)
}
 0x4aa   :  { %444 = dma.vmem_to_hbm [thread:$0]  %s442_s8, 32, %s856_s5, [#allocation8]  }
 0x4ab   :  { %s657_s10 = scalar_lea.vmem %s452_s22, 32  ;;  %p662_p13 = scmp.lt.s32.totalorder %s452_s22, %s452_s22 }
 0x4ac   :  { %p658_p12 = scmp.ne.s32.totalorder %s452_s22, %s657_s10  ;;  %p663_p0 = scmp.lt.s32.totalorder %s657_s10, %s657_s10 }
 0x4ae   :  { %p664_p1 = por %p663_p0, %p662_p13 }
 0x4b0   :  { %p665_p2 = pnand %p664_p1, %p658_p12 }
 0x4b2   :  { %668 = shalt.err (!%p665_p2)
}
 0x4b3   :  { %s669_s13 = scalar_lea.hbm %s857_s6, 32 }
 0x4b4   :  { %p670_p3 = scmp.ne.s32.totalorder %s857_s6, %s669_s13  ;;  %p673_p4 = scmp.lt.u32.totalorder %s669_s13, %s857_s6 }
 0x4b6   :  { %p675_p5 = pnand %p673_p4, %p670_p3 }
 0x4b8   :  { %678 = shalt.err (!%p675_p5)
}
 0x4b9   :  { %454 = dma.vmem_to_hbm [thread:$0]  %s452_s22, 32, %s857_s6, [#allocation16]  }
 0x4ba   :  { %685 = dma.done.wait [#allocation8], 32  }
 0x4bb   :  { %686 = vsyncadd [#allocation8], 4294967264 }
 0x4bc   :  { %687 = dma.done.wait [#allocation16], 32  }
 0x4bd   :  { %688 = vsyncadd [#allocation16], 4294967264 }
 0x4be   :  { %461 = vsyncpa [#allocation7], 1 }
 0x4bf   :  { %462 = vsyncpa [#allocation10], 1 }
 0x4c0   :  { %463 = vsyncpa [#allocation13], 1 }
 0x4c1   :  { %464 = vsyncpa [#allocation8], 1 }
 0x4c2   :  { %465 = vsyncpa [#allocation16], 1 }

</bundles_post_ra>
